<compile_context>
chip_gen: v7x
topology: tpu7x:2x2x1
jax: 0.10.0
libtpu: 0.0.40
codegen_flags: <defaults>
</compile_context>

<pallas_src>
import jax
import jax.numpy as jnp
import numpy as np
from jax import lax
from jax.experimental import pallas as pl
from jax.experimental.pallas import tpu as pltpu

_DEF_BLOCK_BYTES = 8 * 1024 * 1024     # ~8 MiB of x fetched per grid step


def _round_up(n, m):
    return ((n + m - 1) // m) * m


def _vmem_cap_bytes():
    # Per-generation ceiling on the scoped-VMEM request (v7x: 64 MiB physical,
    # v5e/v6e: 128 MiB).  Fall back to the tightest (v7x) assumption.
    try:
        return int(pltpu.get_tpu_info().vmem_capacity_bytes) * 3 // 4
    except Exception:
        return 48 * 1024 * 1024


def _make_kernel(L, to):
    odd_l = bool(L % 2)

    def kernel(x_ref, o_ref, carry_ref):
        j = pl.program_id(2)              # Lo tile index (innermost, sequential)

        @pl.when(j == 0)
        def _init():                      # left zero-pad for the first tile
            carry_ref[...] = jnp.zeros_like(carry_ref)

        # Deinterleave the (bt, 2*to, ct) pair block: even rows are the centre
        # taps x[2o], odd rows are the right taps x[2o+1].
        even = x_ref[:, pl.ds(0, to, stride=2), :].astype(jnp.float32)
        odd = x_ref[:, pl.ds(1, to, stride=2), :].astype(jnp.float32)

        ridx = lax.broadcasted_iota(jnp.int32, (1, to, 1), 1)
        if odd_l:
            # For odd L the right tap of the last valid output row is the zero
            # pad; the ragged edge block holds stale data there -> zero it.
            odd = jnp.where(2 * (j * to + ridx) + 1 < L, odd, 0.0)

        # Left taps x[2o-1] = odd shifted down by one row; row 0 of the tile
        # comes from the carry (previous tile's last odd row, or the left pad).
        left = pltpu.roll(odd, shift=1, axis=1)
        left = jnp.where(ridx == 0, carry_ref[...], left)

        o_ref[...] = ((left + even + odd) * jnp.float32(1.0 / 3.0)).astype(o_ref.dtype)

        # Hand this tile's last odd row (x[:, 2*(j+1)*to - 1]) to the next tile.
        carry_ref[...] = odd[:, to - 1:to, :]

    return kernel


def downsampler(x, mask, *, block_bytes=_DEF_BLOCK_BYTES):
    """x: (B, L, C) float, mask: (B, L) bool -> ((B, Lo, C), (B, Lo) bool)."""
    B, L, C = x.shape
    assert mask.shape == (B, L)
    Lo = (L - 1) // 2 + 1                 # avg_pool1d out length (k=3, s=2, p=1)
    itemsize = jnp.dtype(x.dtype).itemsize

    vmem_cap = _vmem_cap_bytes()
    block_bytes = min(block_bytes, vmem_cap // 6)

    # Channel tile: full C (fully contiguous DMA rows).  Split only when B == 1
    # so the grid still has >= 2 parallel steps for v7x's two TensorCores.
    # TODO(synk): if the C < 128 path ever becomes hot, pad C to 128 in the
    # wrapper so output stores are lane-dense instead of masked.
    if B == 1 and C >= 256:
        ct = _round_up(pl.cdiv(C, 2), 128)
    else:
        ct = C

    # Lo tile (multiple of 8 rows) and batch tile under the per-step budget.
    row_bytes = 2 * ct * itemsize         # input bytes per output row
    to_full = _round_up(Lo, 8)
    if to_full * row_bytes <= block_bytes:
        to = to_full                      # whole Lo extent in one tile
        bt = max(1, block_bytes // (to * row_bytes))
    else:
        to = max(8, (block_bytes // row_bytes) // 8 * 8)
        bt = 1
    bt = min(bt, B)
    if B >= 2:
        bt = min(bt, pl.cdiv(B, 2))       # guarantee >= 2 parallel batch steps

    nb, nc, nj = pl.cdiv(B, bt), pl.cdiv(C, ct), pl.cdiv(Lo, to)

    in_block = bt * 2 * to * ct * itemsize
    out_block = bt * to * ct * itemsize
    vmem_limit = min(vmem_cap,
                     max(32 * 1024 * 1024,
                         2 * (in_block + out_block) + 2 * in_block + (4 << 20)))

    x_out = pl.pallas_call(
        _make_kernel(L, to),
        out_shape=jax.ShapeDtypeStruct((B, Lo, C), x.dtype),
        grid_spec=pltpu.PrefetchScalarGridSpec(
            num_scalar_prefetch=0,
            grid=(nb, nc, nj),
            in_specs=[pl.BlockSpec((bt, 2 * to, ct), lambda b, c, j: (b, j, c))],
            out_specs=pl.BlockSpec((bt, to, ct), lambda b, c, j: (b, j, c)),
            scratch_shapes=[pltpu.VMEM((bt, 1, ct), jnp.float32)],
        ),
        compiler_params=pltpu.CompilerParams(
            dimension_semantics=("parallel", "parallel", "arbitrary"),
            vmem_limit_bytes=int(vmem_limit),
        ),
        cost_estimate=pl.CostEstimate(
            flops=3 * B * Lo * C,
            transcendentals=0,
            bytes_accessed=(B * L * C + B * Lo * C) * itemsize,
        ),
    )(x)

    # ---------------- mask branch: O(B*L) bool glue ----------------
    # count_include_pad=False only changes the (positive) divisor and the sum
    # is >= 0, so (avg > 0) == OR over the in-bounds taps; mask[:, 0] = 1.0 is
    # an OR with (o == 0).  Mirrors the torch.no_grad bookkeeping exactly.
    mb = mask.astype(jnp.bool_)
    mp = jnp.pad(mb, ((0, 0), (1, 1)))                 # bool pad -> False
    m_out = (mp[:, 0:2 * Lo:2]           # mask[2o-1] (False pad at o == 0)
             | mp[:, 1:2 * Lo:2]         # mask[2o]
             | mp[:, 2:2 * Lo + 2:2])    # mask[2o+1] (False pad past the end)
    m_out = m_out.at[:, 0].set(True)
    return x_out, m_out


def _reference(x, mask):
    """Pure-JAX reference mirroring the PyTorch forward."""
    B, L, C = x.shape
    Lo = (L - 1) // 2 + 1
    xp = jnp.pad(x, ((0, 0), (1, 1), (0, 0)))
    xo = (xp[:, 0:2 * Lo:2, :] + xp[:, 1:2 * Lo:2, :] + xp[:, 2:2 * Lo + 2:2, :]) / 3.0
    m = mask.astype(jnp.float32)
    mp = jnp.pad(m, ((0, 0), (1, 1)))
    msum = mp[:, 0:2 * Lo:2] + mp[:, 1:2 * Lo:2] + mp[:, 2:2 * Lo + 2:2]
    o = jnp.arange(Lo)
    cnt = (jnp.minimum(2 * o + 1, L - 1) - jnp.maximum(2 * o - 1, 0) + 1).astype(jnp.float32)
    mavg = msum / cnt[None, :]
    mavg = mavg.at[:, 0].set(1.0)
    return xo, mavg > 0.0


if __name__ == "__main__":
    root = jax.random.PRNGKey(0)

    cases = [
        # (B, L, C, block_bytes) -- all small, each exercising a different path
        (2, 16, 48, None),          # even L, small unaligned C, single Lo tile
        (2, 15, 128, None),         # odd L (right zero-pad tap), lane-aligned C
        (3, 37, 256, 16 * 1024),    # tiny budget -> Lo tiling + carry across tiles
        (1, 20, 384, None),         # B == 1 -> channel split keeps 2 parallel steps
    ]
    for i, (B, L, C, bb) in enumerate(cases):
        kx, km = jax.random.split(jax.random.fold_in(root, i))
        x = jax.random.normal(kx, (B, L, C), dtype=jnp.float32)
        lengths = jax.random.randint(km, (B,), 1, L + 1)
        mask = jnp.arange(L)[None, :] < lengths[:, None]        # (B, L) bool
        kwargs = {} if bb is None else {"block_bytes": bb}
        x_out, m_out = downsampler(x, mask, **kwargs)
        jax.block_until_ready((x_out, m_out))
        x_ref, m_ref = _reference(x, mask)
        np.testing.assert_allclose(np.asarray(x_out), np.asarray(x_ref),
                                   rtol=1e-5, atol=1e-5)
        np.testing.assert_array_equal(np.asarray(m_out), np.asarray(m_ref))

    print("KERNEL_OK")
</pallas_src>

<mosaic_0001>
module attributes {stable_mosaic.version = 11 : i64} {
  func.func @kernel(%arg0: i32, %arg1: i32, %arg2: i32, %arg3: memref<1x16x48xf32, #tpu.memory_space<vmem>>, %arg4: memref<1x8x48xf32, #tpu.memory_space<vmem>>, %arg5: memref<1x1x48xf32, #tpu.memory_space<vmem>>) attributes {dimension_semantics = [#tpu.dimension_semantics<parallel>, #tpu.dimension_semantics<parallel>, #tpu.dimension_semantics<arbitrary>], iteration_bounds = array<i64: 2, 1, 1>, scalar_prefetch = 0 : i64, scratch_operands = 1 : i64, tpu.core_type = #tpu.core_type<tc>, window_params = [{transform_indices = @transform_0, window_bounds = array<i64: 1, 16, 48>}, {transform_indices = @transform_1, window_bounds = array<i64: 1, 8, 48>}]} {
    %c0_i32 = arith.constant 0 : i32
    %0 = arith.cmpi eq, %arg2, %c0_i32 : i32
    %1 = arith.extui %0 : i1 to i32
    %c0_i32_0 = arith.constant 0 : i32
    %2 = arith.cmpi ne, %1, %c0_i32_0 : i32
    scf.if %2 {
      %cst_15 = arith.constant 0.000000e+00 : f32
      %22 = vector.broadcast %cst_15 : f32 to vector<1x1x48xf32>
      %c0_16 = arith.constant 0 : index
      %c0_17 = arith.constant 0 : index
      %c0_18 = arith.constant 0 : index
      %23 = vector.load %arg5[%c0_16, %c0_17, %c0_18] : memref<1x1x48xf32, #tpu.memory_space<vmem>>, vector<1x1x48xf32>
      tpu.vector_store %arg5[%c0_16, %c0_17, %c0_18], %22 {strides = array<i32>} : memref<1x1x48xf32, #tpu.memory_space<vmem>>, vector<1x1x48xf32>,
    } else {
    }
    %c0 = arith.constant 0 : index
    %c0_1 = arith.constant 0 : index
    %c0_2 = arith.constant 0 : index
    %3 = tpu.strided_load %arg3[%c0, %c0_1, %c0_2] {strides = array<i32: 1, 2, 1>} : memref<1x16x48xf32, #tpu.memory_space<vmem>>, vector<1x8x48xf32>
    %c0_3 = arith.constant 0 : index
    %c1 = arith.constant 1 : index
    %c0_4 = arith.constant 0 : index
    %4 = tpu.strided_load %arg3[%c0_3, %c1, %c0_4] {strides = array<i32: 1, 2, 1>} : memref<1x16x48xf32, #tpu.memory_space<vmem>>, vector<1x8x48xf32>
    %5 = tpu.iota {dimensions = array<i32: 1>} : vector<1x8x1xi32>
    %c1_i32 = arith.constant 1 : i32
    %6 = tpu.dynamic_rotate %4 by %c1_i32 dim 1 : vector<1x8x48xf32>, i32 -> vector<1x8x48xf32>
    %c0_i32_5 = arith.constant 0 : i32
    %7 = vector.broadcast %c0_i32_5 : i32 to vector<1x8x1xi32>
    %8 = arith.cmpi eq, %5, %7 : vector<1x8x1xi32>
    %c0_6 = arith.constant 0 : index
    %c0_7 = arith.constant 0 : index
    %c0_8 = arith.constant 0 : index
    %9 = vector.load %arg5[%c0_6, %c0_7, %c0_8] : memref<1x1x48xf32, #tpu.memory_space<vmem>>, vector<1x1x48xf32>
    %10 = vector.shape_cast %8 : vector<1x8x1xi1> to vector<1x8x1xi1>
    %11 = vector.broadcast %10 : vector<1x8x1xi1> to vector<1x8x48xi1>
    %12 = vector.shape_cast %9 : vector<1x1x48xf32> to vector<1x1x48xf32>
    %13 = vector.broadcast %12 : vector<1x1x48xf32> to vector<1x8x48xf32>
    %14 = arith.select %11, %13, %6 : vector<1x8x48xi1>, vector<1x8x48xf32>
    %15 = arith.addf %14, %3 : vector<1x8x48xf32>
    %16 = arith.addf %15, %4 : vector<1x8x48xf32>
    %cst = arith.constant 0.333333343 : f32
    %17 = vector.broadcast %cst : f32 to vector<1x8x48xf32>
    %18 = arith.mulf %16, %17 : vector<1x8x48xf32>
    %c0_9 = arith.constant 0 : index
    %c0_10 = arith.constant 0 : index
    %c0_11 = arith.constant 0 : index
    %19 = vector.load %arg4[%c0_9, %c0_10, %c0_11] : memref<1x8x48xf32, #tpu.memory_space<vmem>>, vector<1x8x48xf32>
    tpu.vector_store %arg4[%c0_9, %c0_10, %c0_11], %18 {strides = array<i32>} : memref<1x8x48xf32, #tpu.memory_space<vmem>>, vector<1x8x48xf32>,
    %20 = vector.extract_strided_slice %4 {offsets = [0, 7, 0], sizes = [1, 1, 48], strides = [1, 1, 1]} : vector<1x8x48xf32> to vector<1x1x48xf32>
    %c0_12 = arith.constant 0 : index
    %c0_13 = arith.constant 0 : index
    %c0_14 = arith.constant 0 : index
    %21 = vector.load %arg5[%c0_12, %c0_13, %c0_14] : memref<1x1x48xf32, #tpu.memory_space<vmem>>, vector<1x1x48xf32>
    tpu.vector_store %arg5[%c0_12, %c0_13, %c0_14], %20 {strides = array<i32>} : memref<1x1x48xf32, #tpu.memory_space<vmem>>, vector<1x1x48xf32>,
    return
  }
  func.func @transform_0(%arg0: i32, %arg1: i32, %arg2: i32) -> (i32, i32, i32) {
    %c0_i32 = arith.constant 0 : i32
    return %arg0, %arg2, %arg1 : i32, i32, i32
  }
  func.func @transform_1(%arg0: i32, %arg1: i32, %arg2: i32) -> (i32, i32, i32) {
    %c0_i32 = arith.constant 0 : i32
    return %arg0, %arg2, %arg1 : i32, i32, i32
  }
}

</mosaic_0001>

<bundles_post_ra>
// kernel: tpu_custom_call.1
= control target key start
LH: loop header
LB: loop body
LE: loop exit
PB: predicated region body
PF: predicated region fallthrough
CT: control target
= control target key end

     0   :  { %6 = vsyncpa [#allocation4], 0  ;;  %s684_s0 = inlined_call_operand.hbm [shape: f32[2,16,48], index: 0, kind: input, shape index: {}]   ;;  %s685_s1 = inlined_call_operand.hbm [shape: f32[2,8,48], index: 1, kind: output, shape index: {}]  }
   0x1   :  { %8 = vsyncpa [#allocation4 + $0x1], 0 }
   0x2   :  { %9 = vsyncpa [#allocation5], 0 }
   0x3   :  { %11 = vsyncpa [#allocation5 + $0x1], 0  ;;  %s510_s6 = smov 0   ;;  %s512_s7 = smov 0  }
   0x4   :  { %s514_s8 = smov 0   ;;  %s516_s9 = smov 0  }
   0x5   :  { %s518_s10 = smov 0   ;;  %s520_s11 = smov 0  }
   0x6 LB: > { %s299_s12 = sadd.s32 4294967295, %s493_s11   ;;  %s300_s13 = sadd.s32 4294967294, %s493_s11   ;;  %s493_s11 = sphi %s520_s11, %s17_s11   ;;  %s489_s10 = sphi %s518_s10, %s700_s10   ;;  %s485_s9 = sphi %s516_s9, %s699_s9   ;;  %s481_s8 = sphi %s514_s8, %s698_s8   ;;  %s477_s7 = sphi %s512_s7, %s697_s7   ;;  %s473_s6 = sphi %s510_s6, %s696_s6  }
   0x7   : > { %s36_s14 = sadd.s32 1, %s489_s10  ;;  %s47_s15 = sadd.s32 1, %s481_s8 }
   0x8   : > { %p38_p0 = scmp.ge.s32.totalorder %s36_s14, 2  ;;  %p54_p1 = scmp.ne.s32.totalorder %s481_s8, %s477_s7 }
   0x9   : > { %p55_p2 = scmp.eq.s32.totalorder %s493_s11, 0  ;;  %p60_p3 = scmp.ne.s32.totalorder %s477_s7, %s473_s6 }
   0xa   : > { %s702_s14 = smov (%p38_p0, %s36_s14), 0  ;;  %p61_p5 = scmp.eq.s32.totalorder %s299_s12, 0 }
   0xb   : > { %p551_p4 = por %p55_p2, %p54_p1  ;;  %s40_s17 = ssub.s32 %s489_s10, %s702_s14 }
   0xc   : > { %p88_p6 = scmp.eq.s32.totalorder %s299_s12, 1  ;;  %p45_p7 = scmp.eq.s32.totalorder %s40_s17, 0 }
   0xd   : > { %p557_p8 = por %p61_p5, %p60_p3  ;;  %p94_p10 = scmp.eq.s32.totalorder %s300_s13, 1 }
   0xe   : > { %p561_p9 = por %p88_p6, %p54_p1  ;;  %p328_p13 = scmp.lt.s32.totalorder %s493_s11, 2 }
   0xf   : > { %s566_s20 = scalar_select %p45_p7, %s481_s8, %s47_s15  }
  0x10   : > { %s689_s19 = scalar_select %p561_p9, 1, 0 }
  0x11   : > { %p568_p11 = por %p94_p10, %p60_p3  ;;  %s114_s22 = sand.u32 1, %s481_s8  }
  0x12   : > { %s303_s23 = sshll.u32 %s114_s22, 4  ;;  %s315_s24 = sshll.u32 %s489_s10, 8 }
  0x13   : > { %s690_s21 = scalar_select %p568_p11, 1, 0 }
  0x14   : > { %s579_s27 = scalar_lea.hbm %s684_s0, %s315_s24  ;;  %s118_s28 = scalar_lea.vmem [#allocation3], %s303_s23 }
  0x15   : > { %s128_s29 = sshll.u32 %s118_s28, 4  ;;  %p585_p0 = pnand %p328_p13, %p551_p4  ;;  %s581_s29 = int_to_ptr.vmem [resolvable:$true] %s128_s29 }
  0x16   : > { %s590_s2 = scalar_lea.sflag [#allocation4], %s114_s22  ;;  %s381_s3 = scalar_lea.hbm %s579_s27, 256 }
  0x17   : > { %p382_p2 = scmp.ne.s32.totalorder %s579_s27, %s381_s3  ;;  %p383_p3 = pneg %p585_p0 }
  0x18   : > { %s386_s12 = scalar_lea.hbm %s684_s0, 512  ;;  %p387_p4 = scmp.lt.u32.totalorder %s579_s27, %s684_s0 }
  0x19   : > { %p384_p5 = pnand %p383_p3, %p382_p2  ;;  %p388_p7 = scmp.lt.u32.totalorder %s386_s12, %s381_s3 }
  0x1a   : > { %p390_p13 = scmp.lt.u32.totalorder %s381_s3, %s579_s27 }
  0x1b   : > { %p385_p6 = pneg %p384_p5  ;;  %p389_p10 = por %p388_p7, %p387_p4 }
  0x1d   : > { %p391_p12 = por %p390_p13, %p389_p10 }
  0x1f   : > { %p392_p1 = pnand %p391_p12, %p385_p6 }
  0x21   : > { %395 = shalt.err (!%p392_p1)
}
  0x22   : > { %s396_s16 = scalar_lea.vmem %s581_s29, 256  ;;  %s495_s17 = smov [#allocation3]  }
  0x23   : > { %p397_p2 = scmp.ne.s32.totalorder %s581_s29, %s396_s16  ;;  %s401_s22 = sshll.u32 %s495_s17, 4  ;;  %s402_s22 = int_to_ptr.vmem [resolvable:$false] %s401_s22 }
  0x24   : > { %s403_s23 = scalar_lea.vmem %s402_s22, 512  ;;  %p404_p9 = scmp.lt.s32.totalorder %s581_s29, %s402_s22 }
  0x25   : > { %p399_p5 = pnand %p397_p2, %p383_p3  ;;  %p405_p4 = scmp.lt.s32.totalorder %s403_s23, %s396_s16 }
  0x27   : > { %p400_p11 = pneg %p399_p5  ;;  %p406_p7 = por %p405_p4, %p404_p9 }
  0x29   : > { %p407_p10 = pnand %p406_p7, %p400_p11 }
  0x2b   : > { %410 = shalt.err (!%p407_p10)
}
  0x2c   : > { %s496_s24 = smov 128   ;;  %s497_s25 = smov 8  }
  0x2d   : > { %323 = dma.hbm_to_vmem [thread:$0]  (!%p585_p0), %s579_s27, 256, %s581_s29, %s590_s2, %s496_s24, %s496_s24, %s497_s25  }
  0x2e   : > { %p136_p12 = scmp.lt.s32.totalorder %s493_s11, 3  ;;  %p692_p1 = scmp.ge.s32.totalorder %s493_s11, 1 }
  0x30   : > { %p137_p3 = pnand %p692_p1, %p136_p12 }
  0x31   : > { %s622_s26 = sand.u32 (!%p137_p3), 1, %s477_s7  }
  0x32   : > { %140 = sbr.rel (%p137_p3) target bundleno = 88 (0x58), region = 24  ;;  %s307_s28 = sshll.u32 (!%p137_p3), %s622_s26, 4 }
  0x33   : > { %s143_s3 = scalar_lea.sflag (!%p137_p3), [#allocation4], %s622_s26  ;;  %s146_s4 = scalar_lea.vmem (!%p137_p3), [#allocation3], %s307_s28 }
  0x39   : > { %464 = dma.done.wait (%p557_p8), %s143_s3, 256  }
  0x3a   : > { %466 = vsyncadd (%p557_p8), %s143_s3, 4294967040  ;;  %vm170_vm0 = vcmask 385024   ;;  %v175_v0 = vlaneseq  ;;  %v498_v1 = vmov 0.0   ;;  %s308_s27 = sshll.u32 %s622_s26, 3  ;;  %vm194_vm1 = vcmask 392199   ;;  %s312_s30 = sshll.u32 %s485_s9, 7 }
  0x3b   : > { %171 = vst.msk [vmem:[#allocation2] sm:$0x1] %vm170_vm0, %v498_v1  ;;  %v309_v3 = vld [vmem:[%s146_s4 + $0x1] ss:$2 sm:$0xff]  ;;  %v172_v4 = vld [vmem:[%s146_s4] ss:$2 sm:$0xff]  ;;  %s637_s12 = scalar_lea.hbm %s685_s1, %s312_s30 }
  0x3c   : > { %v176_v2 = vshrl.u32 %v175_v0, 7  ;;  %v177_v5 = vrot.slane %v309_v3, 7  ;;  %s164_s18 = scalar_lea.vmem [#allocation6], %s308_s27  ;;  %vm192_vm3 = vcmask 392192   ;;  %s197_s13 = scalar_lea.sflag [#allocation5], %s622_s26 }
  0x3d   : > { %s212_s29 = sshll.u32 %s164_s18, 4  ;;  %p693_p9 = scmp.ne.s32.totalorder %s689_s19, 0  ;;  %s632_s29 = int_to_ptr.vmem [resolvable:$true] %s212_s29 }
  0x3e   : > { %vm178_vm2 = vcmp.eq.s32.totalorder %v176_v2, 0  ;;  %s411_s15 = scalar_lea.vmem %s632_s29, 128  ;;  %s499_s9 = smov [#allocation6]  }
  0x3f   : > { %p412_p8 = scmp.ne.s32.totalorder %s632_s29, %s411_s15  ;;  %s415_s16 = sshll.u32 %s499_s9, 4  ;;  %s416_s16 = int_to_ptr.vmem [resolvable:$false] %s415_s16 }
  0x40   : > { %s417_s17 = scalar_lea.vmem %s416_s16, 256  ;;  %p418_p6 = scmp.lt.s32.totalorder %s632_s29, %s416_s16 }
  0x41   : > { %p413_p11 = pnand %p412_p8, %p693_p9  ;;  %p419_p13 = scmp.lt.s32.totalorder %s417_s17, %s411_s15 }
  0x42   : > { %v310_v6 = vld [vmem:[#allocation2] ss:$0 sm:$0xff] }
  0x43   : > { %195 = vst.msk [vmem:[#allocation2 - $0x7] sm:$0x80] %vm194_vm1, %v309_v3  ;;  %v188_v7 = vsel %vm178_vm2, %v310_v6, %v177_v5  ;;  %p414_p0 = pneg %p413_p11  ;;  %p420_p2 = por %p419_p13, %p418_p6 }
  0x44   : > { %v189_v8 = vadd.f32 %v188_v7, %v172_v4 }
  0x45   : > { %p421_p5 = pnand %p420_p2, %p414_p0 }
  0x46   : > { %v190_v9 = vadd.f32 %v309_v3, %v189_v8 }
  0x48   : > { %v191_v10 = vmul.f32 0.33333334, %v190_v9 }
  0x4a   : > { %193 = vst.msk [vmem:[%s164_s18] sm:$0xff] %vm192_vm3, %v191_v10 }
  0x4b   : > { %424 = shalt.err (!%p421_p5)
}
  0x4c   : > { %s425_s22 = scalar_lea.hbm %s637_s12, 128  ;;  %s429_s25 = scalar_lea.hbm %s685_s1, 256 }
  0x4d   : > { %p426_p4 = scmp.ne.s32.totalorder %s637_s12, %s425_s22  ;;  %p430_p12 = scmp.lt.u32.totalorder %s637_s12, %s685_s1 }
  0x4e   : > { %p431_p1 = scmp.lt.u32.totalorder %s429_s25, %s425_s22  ;;  %p433_p8 = scmp.lt.u32.totalorder %s425_s22, %s637_s12 }
  0x4f   : > { %p427_p7 = pnand %p426_p4, %p693_p9 }
  0x50   : > { %p432_p3 = por %p431_p1, %p430_p12 }
  0x51   : > { %p428_p10 = pneg %p427_p7 }
  0x52   : > { %p434_p11 = por %p433_p8, %p432_p3 }
  0x54   : > { %p435_p0 = pnand %p434_p11, %p428_p10 }
  0x56   : > { %438 = shalt.err (!%p435_p0)
}
  0x57   : > { %318 = dma.vmem_to_hbm [thread:$0]  (%p693_p9), %s632_s29, 128, %s637_s12, %s197_s13  }
  0x58 PF: > { %s224_s3 = sand.u32 1, %s473_s6   ;;  %p694_p6 = scmp.ne.s32.totalorder %s690_s21, 0 }
  0x59   : > { %p695_p13 = scmp.ge.s32.totalorder %s493_s11, 2  ;;  %s225_s4 = scalar_lea.sflag [#allocation5], %s224_s3 }
  0x5b   : > { %p325_p2 = pnand %p695_p13, %p694_p6 }
  0x5d   : > { %468 = dma.done.wait (!%p325_p2), %s225_s4, 128  }
  0x5e   : > { %470 = vsyncadd (!%p325_p2), %s225_s4, 4294967168  ;;  %s17_s11 = sadd.s32 1, %s493_s11   ;;  %s696_s6 = smov %s477_s7 }
  0x5f   : > { %p14_p5 = scmp.ge.s32.totalorder %s17_s11, 4   ;;  %s697_s7 = smov %s481_s8 }
  0x60   : > { %s698_s8 = smov %s566_s20  ;;  %s699_s9 = smov %s489_s10 }
  0x61   : > { %s700_s10 = smov %s702_s14  ;;  %16 = sbr.rel (!%p14_p5) target bundleno = 6 (0x6), region = 74 }
  0x68   :  { %230 = vsyncpa [#allocation4], 1 }
  0x69   :  { %232 = vsyncpa [#allocation4 + $0x1], 1 }
  0x6a   :  { %233 = vsyncpa [#allocation5], 1 }
  0x6b   :  { %235 = vsyncpa [#allocation5 + $0x1], 1 }

</bundles_post_ra>
